<compile_context>
chip_gen: v7x
topology: tpu7x:2x2x1
jax: 0.10.0
libtpu: 0.0.40
codegen_flags: <defaults>
</compile_context>

<pallas_src>
import numpy as np
import jax
import jax.numpy as jnp
from jax import lax
from jax.experimental import pallas as pl
from jax.experimental.pallas import tpu as pltpu

# ----------------------------------------------------------------------------
# Spherical-harmonics constants (same as Illumination_layer)
# ----------------------------------------------------------------------------
_A0 = float(np.pi)
_A1 = float(2.0 * np.pi / np.sqrt(3.0))
_A2 = float(2.0 * np.pi / np.sqrt(8.0))
_C0 = float(1.0 / np.sqrt(4.0 * np.pi))
_C1 = float(np.sqrt(3.0) / np.sqrt(4.0 * np.pi))
_C2 = float(3.0 * np.sqrt(5.0) / np.sqrt(12.0 * np.pi))
_D0 = float(0.5 / np.sqrt(3.0))


def _round_up(n, m):
    return ((n + m - 1) // m) * m


def _plan_rows(n, max_tile=512):
    """Row layout for n elements packed 128 per lane-row.

    Returns (rows, tile_rows): rows is a multiple of 8 and of tile_rows;
    tile_rows <= max_tile and (for large arrays) >= 128, so blocks stay large.
    """
    rows = _round_up(max(-(-n // 128), 1), 8)
    if rows <= max_tile:
        return rows, rows
    for ts in range(max_tile, 127, -8):          # prefer a large exact divisor
        if rows % ts == 0:
            return rows, ts
    rows = _round_up(rows, 256)                  # otherwise pad a little, TS=256
    return rows, 256


def _vmem_limit(bytes_per_step):
    # double-buffered blocks + headroom; clamp to stay inside v7x's 64 MiB VMEM
    # (v5e scoped default is only 16 MiB, so always pass an explicit limit).
    need = 3 * bytes_per_step + (4 << 20)
    return int(min(max(need, 16 << 20), 48 << 20))


# ----------------------------------------------------------------------------
# Kernel 1: per-triangle cross products (unnormalized) + per-component
# sum-of-squares accumulated across the triangle-tile axis.
#   corners_ref : (1, 9, TS, 128)  planes [v1x v1y v1z v2x v2y v2z v3x v3y v3z]
#   cross_ref   : (1, 3, TS, 128)  planes [cx cy cz]
#   ss_ref      : (1, 3, 8, 128)   per-lane partial sums (resident accumulator)
# The F.normalize(dim=1) scale (per-batch, per-component over ALL triangles)
# is NOT applied here; it is deferred into the illumination kernel.
# ----------------------------------------------------------------------------
def tri_cross_kernel(corners_ref, cross_ref, ss_ref):
    t = pl.program_id(1)

    @pl.when(t == 0)
    def _():
        ss_ref[...] = jnp.zeros_like(ss_ref)

    v1x, v1y, v1z = corners_ref[0, 0], corners_ref[0, 1], corners_ref[0, 2]
    v2x, v2y, v2z = corners_ref[0, 3], corners_ref[0, 4], corners_ref[0, 5]
    v3x, v3y, v3z = corners_ref[0, 6], corners_ref[0, 7], corners_ref[0, 8]

    e1x, e1y, e1z = v2x - v1x, v2y - v1y, v2z - v1z
    e2x, e2y, e2z = v3x - v1x, v3y - v1y, v3z - v1z

    cx = e1y * e2z - e1z * e2y
    cy = e1z * e2x - e1x * e2z
    cz = e1x * e2y - e1y * e2x

    cross_ref[0, 0] = cx
    cross_ref[0, 1] = cy
    cross_ref[0, 2] = cz

    # per-lane partial sums (sublane reduce only); lanes are reduced in glue.
    ss_ref[0, 0] += jnp.broadcast_to(jnp.sum(cx * cx, axis=0, keepdims=True), (8, 128))
    ss_ref[0, 1] += jnp.broadcast_to(jnp.sum(cy * cy, axis=0, keepdims=True), (8, 128))
    ss_ref[0, 2] += jnp.broadcast_to(jnp.sum(cz * cz, axis=0, keepdims=True), (8, 128))


def _tri_cross_pallas(corners, tile_rows):
    B, _, S_t, _ = corners.shape
    grid = (B, S_t // tile_rows)
    in_spec = pl.BlockSpec((1, 9, tile_rows, 128), lambda b, t: (b, 0, t, 0))
    cross_spec = pl.BlockSpec((1, 3, tile_rows, 128), lambda b, t: (b, 0, t, 0))
    ss_spec = pl.BlockSpec((1, 3, 8, 128), lambda b, t: (b, 0, 0, 0))
    bytes_per_step = (9 + 3) * tile_rows * 128 * 4 + 3 * 8 * 128 * 4
    return pl.pallas_call(
        tri_cross_kernel,
        out_shape=(jax.ShapeDtypeStruct((B, 3, S_t, 128), jnp.float32),
                   jax.ShapeDtypeStruct((B, 3, 8, 128), jnp.float32)),
        grid=grid,
        in_specs=[in_spec],
        out_specs=(cross_spec, ss_spec),
        compiler_params=pltpu.CompilerParams(
            dimension_semantics=("parallel", "arbitrary"),
            vmem_limit_bytes=_vmem_limit(bytes_per_step)),
    )(corners)


# ----------------------------------------------------------------------------
# Kernel 2: deferred tri-normal scale + vertex-normal normalization + SH
# lighting + texture modulation.
#   sc_ref  : (B, 30) f32 SMEM (scalar prefetch): gamma(27, +0.8 on band 0)
#             followed by the 3 deferred per-component normalize scales.
#   vs_ref  : (1, 3, TS, 128) summed adjacent (unnormalized) triangle normals
#   tex_ref : (1, 3, TS, 128) vertex texture planes
#   out_ref : (1, 3, TS, 128) lit vertex color planes
# ----------------------------------------------------------------------------
def illum_kernel(sc_ref, vs_ref, tex_ref, out_ref):
    b = pl.program_id(0)

    vx = vs_ref[0, 0] * sc_ref[b, 27]
    vy = vs_ref[0, 1] * sc_ref[b, 28]
    vz = vs_ref[0, 2] * sc_ref[b, 29]

    # No eps clamp: matches torch (v_norm / v_norm.norm()); rsqrt on the EUP.
    inv = lax.rsqrt(vx * vx + vy * vy + vz * vz)
    nx = vx * inv
    ny = vy * inv
    nz = vz * inv

    h0 = _A0 * _C0                                  # python constant
    h1 = (-_A1 * _C1) * ny
    h2 = (_A1 * _C1) * nz
    h3 = (-_A1 * _C1) * nx
    h4 = (_A2 * _C2) * (nx * ny)
    h5 = (-_A2 * _C2) * (ny * nz)
    h6 = (_A2 * _C2 * _D0) * (3.0 * nz * nz - 1.0)
    h7 = (-_A2 * _C2) * (nx * nz)
    h8 = (_A2 * _C2 * 0.5) * (nx * nx - ny * ny)

    for c in range(3):
        def g(j, c=c):
            return sc_ref[b, 9 * c + j]             # SMEM scalar read
        light = (g(0) * h0
                 + g(1) * h1 + g(2) * h2 + g(3) * h3
                 + g(4) * h4 + g(5) * h5 + g(6) * h6
                 + g(7) * h7 + g(8) * h8)
        out_ref[0, c] = tex_ref[0, c] * light


def _illum_pallas(scalars, vs_planes, tex_planes, tile_rows):
    B, _, S_v, _ = vs_planes.shape
    plane = pl.BlockSpec((1, 3, tile_rows, 128), lambda b, t, sc: (b, 0, t, 0))
    grid_spec = pltpu.PrefetchScalarGridSpec(
        num_scalar_prefetch=1,                      # gamma + deferred scales -> SMEM
        grid=(B, S_v // tile_rows),
        in_specs=[plane, plane],
        out_specs=plane,
    )
    bytes_per_step = 9 * tile_rows * 128 * 4
    return pl.pallas_call(
        illum_kernel,
        out_shape=jax.ShapeDtypeStruct((B, 3, S_v, 128), jnp.float32),
        grid_spec=grid_spec,
        compiler_params=pltpu.CompilerParams(
            dimension_semantics=("parallel", "parallel"),
            vmem_limit_bytes=_vmem_limit(bytes_per_step)),
    )(scalars, vs_planes, tex_planes)


# ----------------------------------------------------------------------------
# Forward pass
# ----------------------------------------------------------------------------
def render_3dmm_forward(rott_geometry, texture, diffuse_sh, tris, vert_tris):
    """
    rott_geometry: (B, V, 3) f32
    texture      : (B, V, 3) f32
    diffuse_sh   : (B, 27)   f32
    tris         : (T, 3)    i32  triangle vertex indices
    vert_tris    : (V, K)    i32  adjacent-triangle indices per vertex
    returns lit per-vertex colors (B, V, 3).
    """
    B, V, _ = rott_geometry.shape
    T = tris.shape[0]
    K = vert_tris.shape[1]

    geo = rott_geometry.astype(jnp.float32)
    tex = texture.astype(jnp.float32)

    T_rows, T_tile = _plan_rows(T)
    T_pad = T_rows * 128
    V_rows, V_tile = _plan_rows(V)
    V_pad = V_rows * 128

    # --- ONE gather builds all 9 corner/component planes (lane-dense) --------
    # padded triangles have all corners = vertex 0 -> zero edges -> zero cross.
    tris_pad = jnp.pad(tris.astype(jnp.int32), ((0, T_pad - T), (0, 0)))
    corner_idx = tris_pad[:, :, None] * 3 + jnp.arange(3, dtype=jnp.int32)[None, None, :]
    corner_idx = jnp.transpose(corner_idx, (1, 2, 0)).reshape(9 * T_pad)   # v1x v1y v1z v2x ... v3z
    corners = jnp.take(geo.reshape(B, V * 3), corner_idx, axis=1)          # (B, 9*T_pad)
    corners = corners.reshape(B, 9, T_rows, 128)

    cross, ss = _tri_cross_pallas(corners, T_tile)          # (B,3,T_rows,128), (B,3,8,128)

    # per-batch, per-component F.normalize(dim=1) scale (deferred into illum):
    # max(sqrt(ss), 1e-12) == sqrt(max(ss, 1e-24))
    ss_vals = jnp.sum(ss[:, :, 0, :], axis=-1)               # (B, 3) lane reduce of partials
    inv_tn = lax.rsqrt(jnp.maximum(ss_vals, 1e-24))          # (B, 3)

    # --- adjacency sum: ONE gather straight from the padded cross planes -----
    vt_pad = jnp.pad(vert_tris.astype(jnp.int32), ((0, V_pad - V), (0, 0)))  # pad rows -> tri 0
    vt_flat = vt_pad.reshape(V_pad * K)
    adj_idx = (jnp.arange(3, dtype=jnp.int32)[:, None] * T_pad + vt_flat[None, :]).reshape(3 * V_pad * K)
    vsum = jnp.take(cross.reshape(B, 3 * T_pad), adj_idx, axis=1)            # (B, 3*V_pad*K)
    vsum = vsum.reshape(B, 3, V_pad, K).sum(axis=3)                          # (B, 3, V_pad)
    vs_planes = vsum.reshape(B, 3, V_rows, 128)

    # --- texture component planes (single transpose + pad; pad value 0 keeps
    #     any NaN/garbage light on padded lanes harmless before the [:V] slice)
    tex_planes = jnp.pad(jnp.transpose(tex, (0, 2, 1)), ((0, 0), (0, 0), (0, V_pad - V)))
    tex_planes = tex_planes.reshape(B, 3, V_rows, 128)

    # --- SH coefficients (+0.8 ambient) and deferred scales -> SMEM ----------
    gamma = diffuse_sh.reshape(B, 3, 9).astype(jnp.float32)
    gamma = gamma.at[:, :, 0].add(0.8)
    scalars = jnp.concatenate([gamma.reshape(B, 27), inv_tn], axis=1)        # (B, 30)

    lit = _illum_pallas(scalars, vs_planes, tex_planes, V_tile)              # (B, 3, V_rows, 128)
    face_color = jnp.transpose(lit.reshape(B, 3, V_pad)[:, :, :V], (0, 2, 1))  # (B, V, 3)

    # TODO(synk): MeshRenderer (rasterization + softmax_rgb_blend) and the final
    #             torch.clamp(rendered_img, 0, 255) are not translatable to Pallas.
    return face_color


# ----------------------------------------------------------------------------
# Pure-JAX reference (mirrors the PyTorch math exactly) for verification
# ----------------------------------------------------------------------------
def reference_forward(rott_geometry, texture, diffuse_sh, tris, vert_tris):
    v1 = jnp.take(rott_geometry, tris[:, 0], axis=1)
    v2 = jnp.take(rott_geometry, tris[:, 1], axis=1)
    v3 = jnp.take(rott_geometry, tris[:, 2], axis=1)
    nnorm = jnp.cross(v2 - v1, v3 - v1, axis=2)                       # (B, T, 3)
    denom = jnp.maximum(jnp.linalg.norm(nnorm, axis=1, keepdims=True), 1e-12)
    tri_normal = nnorm / denom                                        # F.normalize(dim=1)
    v_norm = tri_normal[:, vert_tris, :].sum(2)                       # (B, V, 3)
    vert_normal = v_norm / jnp.linalg.norm(v_norm, axis=2, keepdims=True)

    B = rott_geometry.shape[0]
    gamma = diffuse_sh.reshape(B, 3, 9)
    gamma = gamma.at[:, :, 0].add(0.8)
    gamma = jnp.transpose(gamma, (0, 2, 1))                           # (B, 9, 3)
    nx, ny, nz = vert_normal[..., 0], vert_normal[..., 1], vert_normal[..., 2]
    Y = jnp.stack(
        [
            jnp.ones_like(nx) * _A0 * _C0,
            -_A1 * _C1 * ny,
            _A1 * _C1 * nz,
            -_A1 * _C1 * nx,
            _A2 * _C2 * nx * ny,
            -_A2 * _C2 * ny * nz,
            _A2 * _C2 * _D0 * (3.0 * nz ** 2 - 1.0),
            -_A2 * _C2 * nx * nz,
            _A2 * _C2 * 0.5 * (nx ** 2 - ny ** 2),
        ],
        axis=-1,
    )                                                                 # (B, V, 9)
    lighting = jnp.einsum("bvj,bjc->bvc", Y, gamma)
    return texture * lighting


# ----------------------------------------------------------------------------
if __name__ == "__main__":
    B, V, T, K = 2, 160, 300, 8

    # deterministic synthetic topology (stand-in for topology_info.npy)
    idx = np.arange(T)
    tris_np = np.stack([idx % V, (idx + 1) % V, (idx + 7) % V], axis=1).astype(np.int32)
    vert_tris_np = ((np.arange(V)[:, None] * 5 + np.arange(K)[None, :]) % T).astype(np.int32)
    tris = jnp.asarray(tris_np)
    vert_tris = jnp.asarray(vert_tris_np)

    key = jax.random.PRNGKey(0)
    k1, k2, k3 = jax.random.split(key, 3)
    rott_geometry = jax.random.normal(k1, (B, V, 3), dtype=jnp.float32)
    texture = jax.random.uniform(k2, (B, V, 3), dtype=jnp.float32, minval=0.0, maxval=255.0)
    diffuse_sh = 0.1 * jax.random.normal(k3, (B, 27), dtype=jnp.float32)

    fwd = jax.jit(render_3dmm_forward)
    out = fwd(rott_geometry, texture, diffuse_sh, tris, vert_tris)
    out = jax.block_until_ready(out)

    ref = reference_forward(rott_geometry, texture, diffuse_sh, tris, vert_tris)
    ref = jax.block_until_ready(ref)

    assert out.shape == (B, V, 3)
    assert bool(jnp.allclose(out, ref, rtol=1e-4, atol=1e-4)), "mismatch vs reference"
    print("KERNEL_OK")
</pallas_src>

<mosaic_0001>
module attributes {stable_mosaic.version = 11 : i64} {
  func.func @tri_cross_kernel(%arg0: i32, %arg1: i32, %arg2: memref<1x9x8x128xf32, #tpu.memory_space<vmem>>, %arg3: memref<1x3x8x128xf32, #tpu.memory_space<vmem>>, %arg4: memref<1x3x8x128xf32, #tpu.memory_space<vmem>>) attributes {dimension_semantics = [#tpu.dimension_semantics<parallel>, #tpu.dimension_semantics<arbitrary>], iteration_bounds = array<i64: 2, 1>, scalar_prefetch = 0 : i64, scratch_operands = 0 : i64, tpu.core_type = #tpu.core_type<tc>, window_params = [{transform_indices = @transform_0, window_bounds = array<i64: 1, 9, 8, 128>}, {transform_indices = @transform_1, window_bounds = array<i64: 1, 3, 8, 128>}, {transform_indices = @transform_2, window_bounds = array<i64: 1, 3, 8, 128>}]} {
    %c0_i32 = arith.constant 0 : i32
    %0 = arith.cmpi eq, %arg1, %c0_i32 : i32
    %1 = arith.extui %0 : i1 to i32
    %c0_i32_0 = arith.constant 0 : i32
    %2 = arith.cmpi ne, %1, %c0_i32_0 : i32
    scf.if %2 {
      %cst_66 = arith.constant 0.000000e+00 : f32
      %78 = vector.broadcast %cst_66 : f32 to vector<1x3x8x128xf32>
      %c0_67 = arith.constant 0 : index
      %c0_68 = arith.constant 0 : index
      %c0_69 = arith.constant 0 : index
      %c0_70 = arith.constant 0 : index
      %79 = vector.load %arg4[%c0_67, %c0_68, %c0_69, %c0_70] : memref<1x3x8x128xf32, #tpu.memory_space<vmem>>, vector<1x3x8x128xf32>
      tpu.vector_store %arg4[%c0_67, %c0_68, %c0_69, %c0_70], %78 {strides = array<i32>} : memref<1x3x8x128xf32, #tpu.memory_space<vmem>>, vector<1x3x8x128xf32>,
    } else {
    }
    %c0 = arith.constant 0 : index
    %c0_1 = arith.constant 0 : index
    %c0_2 = arith.constant 0 : index
    %c0_3 = arith.constant 0 : index
    %3 = vector.load %arg2[%c0, %c0_1, %c0_2, %c0_3] : memref<1x9x8x128xf32, #tpu.memory_space<vmem>>, vector<1x1x8x128xf32>
    %4 = vector.shape_cast %3 : vector<1x1x8x128xf32> to vector<8x128xf32>
    %c0_4 = arith.constant 0 : index
    %c1 = arith.constant 1 : index
    %c0_5 = arith.constant 0 : index
    %c0_6 = arith.constant 0 : index
    %5 = vector.load %arg2[%c0_4, %c1, %c0_5, %c0_6] : memref<1x9x8x128xf32, #tpu.memory_space<vmem>>, vector<1x1x8x128xf32>
    %6 = vector.shape_cast %5 : vector<1x1x8x128xf32> to vector<8x128xf32>
    %c0_7 = arith.constant 0 : index
    %c2 = arith.constant 2 : index
    %c0_8 = arith.constant 0 : index
    %c0_9 = arith.constant 0 : index
    %7 = vector.load %arg2[%c0_7, %c2, %c0_8, %c0_9] : memref<1x9x8x128xf32, #tpu.memory_space<vmem>>, vector<1x1x8x128xf32>
    %8 = vector.shape_cast %7 : vector<1x1x8x128xf32> to vector<8x128xf32>
    %c0_10 = arith.constant 0 : index
    %c3 = arith.constant 3 : index
    %c0_11 = arith.constant 0 : index
    %c0_12 = arith.constant 0 : index
    %9 = vector.load %arg2[%c0_10, %c3, %c0_11, %c0_12] : memref<1x9x8x128xf32, #tpu.memory_space<vmem>>, vector<1x1x8x128xf32>
    %10 = vector.shape_cast %9 : vector<1x1x8x128xf32> to vector<8x128xf32>
    %c0_13 = arith.constant 0 : index
    %c4 = arith.constant 4 : index
    %c0_14 = arith.constant 0 : index
    %c0_15 = arith.constant 0 : index
    %11 = vector.load %arg2[%c0_13, %c4, %c0_14, %c0_15] : memref<1x9x8x128xf32, #tpu.memory_space<vmem>>, vector<1x1x8x128xf32>
    %12 = vector.shape_cast %11 : vector<1x1x8x128xf32> to vector<8x128xf32>
    %c0_16 = arith.constant 0 : index
    %c5 = arith.constant 5 : index
    %c0_17 = arith.constant 0 : index
    %c0_18 = arith.constant 0 : index
    %13 = vector.load %arg2[%c0_16, %c5, %c0_17, %c0_18] : memref<1x9x8x128xf32, #tpu.memory_space<vmem>>, vector<1x1x8x128xf32>
    %14 = vector.shape_cast %13 : vector<1x1x8x128xf32> to vector<8x128xf32>
    %c0_19 = arith.constant 0 : index
    %c6 = arith.constant 6 : index
    %c0_20 = arith.constant 0 : index
    %c0_21 = arith.constant 0 : index
    %15 = vector.load %arg2[%c0_19, %c6, %c0_20, %c0_21] : memref<1x9x8x128xf32, #tpu.memory_space<vmem>>, vector<1x1x8x128xf32>
    %16 = vector.shape_cast %15 : vector<1x1x8x128xf32> to vector<8x128xf32>
    %c0_22 = arith.constant 0 : index
    %c7 = arith.constant 7 : index
    %c0_23 = arith.constant 0 : index
    %c0_24 = arith.constant 0 : index
    %17 = vector.load %arg2[%c0_22, %c7, %c0_23, %c0_24] : memref<1x9x8x128xf32, #tpu.memory_space<vmem>>, vector<1x1x8x128xf32>
    %18 = vector.shape_cast %17 : vector<1x1x8x128xf32> to vector<8x128xf32>
    %c0_25 = arith.constant 0 : index
    %c8 = arith.constant 8 : index
    %c0_26 = arith.constant 0 : index
    %c0_27 = arith.constant 0 : index
    %19 = vector.load %arg2[%c0_25, %c8, %c0_26, %c0_27] : memref<1x9x8x128xf32, #tpu.memory_space<vmem>>, vector<1x1x8x128xf32>
    %20 = vector.shape_cast %19 : vector<1x1x8x128xf32> to vector<8x128xf32>
    %21 = arith.subf %10, %4 : vector<8x128xf32>
    %22 = arith.subf %12, %6 : vector<8x128xf32>
    %23 = arith.subf %14, %8 : vector<8x128xf32>
    %24 = arith.subf %16, %4 : vector<8x128xf32>
    %25 = arith.subf %18, %6 : vector<8x128xf32>
    %26 = arith.subf %20, %8 : vector<8x128xf32>
    %27 = arith.mulf %22, %26 : vector<8x128xf32>
    %28 = arith.mulf %23, %25 : vector<8x128xf32>
    %29 = arith.subf %27, %28 : vector<8x128xf32>
    %30 = arith.mulf %23, %24 : vector<8x128xf32>
    %31 = arith.mulf %21, %26 : vector<8x128xf32>
    %32 = arith.subf %30, %31 : vector<8x128xf32>
    %33 = arith.mulf %21, %25 : vector<8x128xf32>
    %34 = arith.mulf %22, %24 : vector<8x128xf32>
    %35 = arith.subf %33, %34 : vector<8x128xf32>
    %c0_28 = arith.constant 0 : index
    %c0_29 = arith.constant 0 : index
    %c0_30 = arith.constant 0 : index
    %c0_31 = arith.constant 0 : index
    %36 = vector.load %arg3[%c0_28, %c0_29, %c0_30, %c0_31] : memref<1x3x8x128xf32, #tpu.memory_space<vmem>>, vector<1x1x8x128xf32>
    %37 = vector.shape_cast %36 : vector<1x1x8x128xf32> to vector<8x128xf32>
    %38 = vector.shape_cast %29 : vector<8x128xf32> to vector<1x1x8x128xf32>
    tpu.vector_store %arg3[%c0_28, %c0_29, %c0_30, %c0_31], %38 {strides = array<i32>} : memref<1x3x8x128xf32, #tpu.memory_space<vmem>>, vector<1x1x8x128xf32>,
    %c0_32 = arith.constant 0 : index
    %c1_33 = arith.constant 1 : index
    %c0_34 = arith.constant 0 : index
    %c0_35 = arith.constant 0 : index
    %39 = vector.load %arg3[%c0_32, %c1_33, %c0_34, %c0_35] : memref<1x3x8x128xf32, #tpu.memory_space<vmem>>, vector<1x1x8x128xf32>
    %40 = vector.shape_cast %39 : vector<1x1x8x128xf32> to vector<8x128xf32>
    %41 = vector.shape_cast %32 : vector<8x128xf32> to vector<1x1x8x128xf32>
    tpu.vector_store %arg3[%c0_32, %c1_33, %c0_34, %c0_35], %41 {strides = array<i32>} : memref<1x3x8x128xf32, #tpu.memory_space<vmem>>, vector<1x1x8x128xf32>,
    %c0_36 = arith.constant 0 : index
    %c2_37 = arith.constant 2 : index
    %c0_38 = arith.constant 0 : index
    %c0_39 = arith.constant 0 : index
    %42 = vector.load %arg3[%c0_36, %c2_37, %c0_38, %c0_39] : memref<1x3x8x128xf32, #tpu.memory_space<vmem>>, vector<1x1x8x128xf32>
    %43 = vector.shape_cast %42 : vector<1x1x8x128xf32> to vector<8x128xf32>
    %44 = vector.shape_cast %35 : vector<8x128xf32> to vector<1x1x8x128xf32>
    tpu.vector_store %arg3[%c0_36, %c2_37, %c0_38, %c0_39], %44 {strides = array<i32>} : memref<1x3x8x128xf32, #tpu.memory_space<vmem>>, vector<1x1x8x128xf32>,
    %c0_40 = arith.constant 0 : index
    %c0_41 = arith.constant 0 : index
    %c0_42 = arith.constant 0 : index
    %c0_43 = arith.constant 0 : index
    %45 = vector.load %arg4[%c0_40, %c0_41, %c0_42, %c0_43] : memref<1x3x8x128xf32, #tpu.memory_space<vmem>>, vector<1x1x8x128xf32>
    %46 = vector.shape_cast %45 : vector<1x1x8x128xf32> to vector<8x128xf32>
    %47 = arith.mulf %29, %29 : vector<8x128xf32>
    %cst = arith.constant dense<0.000000e+00> : vector<128xf32>
    %48 = vector.multi_reduction <add>, %47, %cst [0] : vector<8x128xf32> to vector<128xf32>
    %49 = vector.shape_cast %48 : vector<128xf32> to vector<1x128xf32>
    %50 = vector.shape_cast %49 : vector<1x128xf32> to vector<1x128xf32>
    %51 = vector.broadcast %50 : vector<1x128xf32> to vector<8x128xf32>
    %52 = arith.addf %46, %51 : vector<8x128xf32>
    %c0_44 = arith.constant 0 : index
    %c0_45 = arith.constant 0 : index
    %c0_46 = arith.constant 0 : index
    %c0_47 = arith.constant 0 : index
    %53 = vector.load %arg4[%c0_44, %c0_45, %c0_46, %c0_47] : memref<1x3x8x128xf32, #tpu.memory_space<vmem>>, vector<1x1x8x128xf32>
    %54 = vector.shape_cast %53 : vector<1x1x8x128xf32> to vector<8x128xf32>
    %55 = vector.shape_cast %52 : vector<8x128xf32> to vector<1x1x8x128xf32>
    tpu.vector_store %arg4[%c0_44, %c0_45, %c0_46, %c0_47], %55 {strides = array<i32>} : memref<1x3x8x128xf32, #tpu.memory_space<vmem>>, vector<1x1x8x128xf32>,
    %c0_48 = arith.constant 0 : index
    %c1_49 = arith.constant 1 : index
    %c0_50 = arith.constant 0 : index
    %c0_51 = arith.constant 0 : index
    %56 = vector.load %arg4[%c0_48, %c1_49, %c0_50, %c0_51] : memref<1x3x8x128xf32, #tpu.memory_space<vmem>>, vector<1x1x8x128xf32>
    %57 = vector.shape_cast %56 : vector<1x1x8x128xf32> to vector<8x128xf32>
    %58 = arith.mulf %32, %32 : vector<8x128xf32>
    %cst_52 = arith.constant dense<0.000000e+00> : vector<128xf32>
    %59 = vector.multi_reduction <add>, %58, %cst_52 [0] : vector<8x128xf32> to vector<128xf32>
    %60 = vector.shape_cast %59 : vector<128xf32> to vector<1x128xf32>
    %61 = vector.shape_cast %60 : vector<1x128xf32> to vector<1x128xf32>
    %62 = vector.broadcast %61 : vector<1x128xf32> to vector<8x128xf32>
    %63 = arith.addf %57, %62 : vector<8x128xf32>
    %c0_53 = arith.constant 0 : index
    %c1_54 = arith.constant 1 : index
    %c0_55 = arith.constant 0 : index
    %c0_56 = arith.constant 0 : index
    %64 = vector.load %arg4[%c0_53, %c1_54, %c0_55, %c0_56] : memref<1x3x8x128xf32, #tpu.memory_space<vmem>>, vector<1x1x8x128xf32>
    %65 = vector.shape_cast %64 : vector<1x1x8x128xf32> to vector<8x128xf32>
    %66 = vector.shape_cast %63 : vector<8x128xf32> to vector<1x1x8x128xf32>
    tpu.vector_store %arg4[%c0_53, %c1_54, %c0_55, %c0_56], %66 {strides = array<i32>} : memref<1x3x8x128xf32, #tpu.memory_space<vmem>>, vector<1x1x8x128xf32>,
    %c0_57 = arith.constant 0 : index
    %c2_58 = arith.constant 2 : index
    %c0_59 = arith.constant 0 : index
    %c0_60 = arith.constant 0 : index
    %67 = vector.load %arg4[%c0_57, %c2_58, %c0_59, %c0_60] : memref<1x3x8x128xf32, #tpu.memory_space<vmem>>, vector<1x1x8x128xf32>
    %68 = vector.shape_cast %67 : vector<1x1x8x128xf32> to vector<8x128xf32>
    %69 = arith.mulf %35, %35 : vector<8x128xf32>
    %cst_61 = arith.constant dense<0.000000e+00> : vector<128xf32>
    %70 = vector.multi_reduction <add>, %69, %cst_61 [0] : vector<8x128xf32> to vector<128xf32>
    %71 = vector.shape_cast %70 : vector<128xf32> to vector<1x128xf32>
    %72 = vector.shape_cast %71 : vector<1x128xf32> to vector<1x128xf32>
    %73 = vector.broadcast %72 : vector<1x128xf32> to vector<8x128xf32>
    %74 = arith.addf %68, %73 : vector<8x128xf32>
    %c0_62 = arith.constant 0 : index
    %c2_63 = arith.constant 2 : index
    %c0_64 = arith.constant 0 : index
    %c0_65 = arith.constant 0 : index
    %75 = vector.load %arg4[%c0_62, %c2_63, %c0_64, %c0_65] : memref<1x3x8x128xf32, #tpu.memory_space<vmem>>, vector<1x1x8x128xf32>
    %76 = vector.shape_cast %75 : vector<1x1x8x128xf32> to vector<8x128xf32>
    %77 = vector.shape_cast %74 : vector<8x128xf32> to vector<1x1x8x128xf32>
    tpu.vector_store %arg4[%c0_62, %c2_63, %c0_64, %c0_65], %77 {strides = array<i32>} : memref<1x3x8x128xf32, #tpu.memory_space<vmem>>, vector<1x1x8x128xf32>,
    return
  }
  func.func @transform_0(%arg0: i32, %arg1: i32) -> (i32, i32, i32, i32) {
    %c0_i32 = arith.constant 0 : i32
    %c0_i32_0 = arith.constant 0 : i32
    %c0_i32_1 = arith.constant 0 : i32
    return %arg0, %c0_i32, %arg1, %c0_i32_0 : i32, i32, i32, i32
  }
  func.func @transform_1(%arg0: i32, %arg1: i32) -> (i32, i32, i32, i32) {
    %c0_i32 = arith.constant 0 : i32
    %c0_i32_0 = arith.constant 0 : i32
    %c0_i32_1 = arith.constant 0 : i32
    return %arg0, %c0_i32, %arg1, %c0_i32_0 : i32, i32, i32, i32
  }
  func.func @transform_2(%arg0: i32, %arg1: i32) -> (i32, i32, i32, i32) {
    %c0_i32 = arith.constant 0 : i32
    %c0_i32_0 = arith.constant 0 : i32
    %c0_i32_1 = arith.constant 0 : i32
    %c0_i32_2 = arith.constant 0 : i32
    return %arg0, %c0_i32, %c0_i32_0, %c0_i32_1 : i32, i32, i32, i32
  }
}

module attributes {stable_mosaic.version = 11 : i64} {
  func.func @illum_kernel(%arg0: i32, %arg1: i32, %arg2: memref<2x30xf32, #tpu.memory_space<smem>>, %arg3: memref<1x3x8x128xf32, #tpu.memory_space<vmem>>, %arg4: memref<1x3x8x128xf32, #tpu.memory_space<vmem>>, %arg5: memref<1x3x8x128xf32, #tpu.memory_space<vmem>>) attributes {dimension_semantics = [#tpu.dimension_semantics<parallel>, #tpu.dimension_semantics<parallel>], iteration_bounds = array<i64: 2, 1>, scalar_prefetch = 1 : i64, scratch_operands = 0 : i64, tpu.core_type = #tpu.core_type<tc>, window_params = [{transform_indices = @transform_0, window_bounds = array<i64: 1, 3, 8, 128>}, {transform_indices = @transform_1, window_bounds = array<i64: 1, 3, 8, 128>}, {transform_indices = @transform_2, window_bounds = array<i64: 1, 3, 8, 128>}]} {
    %c0 = arith.constant 0 : index
    %c0_0 = arith.constant 0 : index
    %c0_1 = arith.constant 0 : index
    %c0_2 = arith.constant 0 : index
    %0 = vector.load %arg3[%c0, %c0_0, %c0_1, %c0_2] : memref<1x3x8x128xf32, #tpu.memory_space<vmem>>, vector<1x1x8x128xf32>
    %1 = vector.shape_cast %0 : vector<1x1x8x128xf32> to vector<8x128xf32>
    %2 = arith.index_cast %arg0 : i32 to index
    %c27 = arith.constant 27 : index
    %3 = memref.load %arg2[%2, %c27] : memref<2x30xf32, #tpu.memory_space<smem>>
    %4 = vector.broadcast %3 : f32 to vector<8x128xf32>
    %5 = arith.mulf %1, %4 : vector<8x128xf32>
    %c0_3 = arith.constant 0 : index
    %c1 = arith.constant 1 : index
    %c0_4 = arith.constant 0 : index
    %c0_5 = arith.constant 0 : index
    %6 = vector.load %arg3[%c0_3, %c1, %c0_4, %c0_5] : memref<1x3x8x128xf32, #tpu.memory_space<vmem>>, vector<1x1x8x128xf32>
    %7 = vector.shape_cast %6 : vector<1x1x8x128xf32> to vector<8x128xf32>
    %8 = arith.index_cast %arg0 : i32 to index
    %c28 = arith.constant 28 : index
    %9 = memref.load %arg2[%8, %c28] : memref<2x30xf32, #tpu.memory_space<smem>>
    %10 = vector.broadcast %9 : f32 to vector<8x128xf32>
    %11 = arith.mulf %7, %10 : vector<8x128xf32>
    %c0_6 = arith.constant 0 : index
    %c2 = arith.constant 2 : index
    %c0_7 = arith.constant 0 : index
    %c0_8 = arith.constant 0 : index
    %12 = vector.load %arg3[%c0_6, %c2, %c0_7, %c0_8] : memref<1x3x8x128xf32, #tpu.memory_space<vmem>>, vector<1x1x8x128xf32>
    %13 = vector.shape_cast %12 : vector<1x1x8x128xf32> to vector<8x128xf32>
    %14 = arith.index_cast %arg0 : i32 to index
    %c29 = arith.constant 29 : index
    %15 = memref.load %arg2[%14, %c29] : memref<2x30xf32, #tpu.memory_space<smem>>
    %16 = vector.broadcast %15 : f32 to vector<8x128xf32>
    %17 = arith.mulf %13, %16 : vector<8x128xf32>
    %18 = arith.mulf %5, %5 : vector<8x128xf32>
    %19 = arith.mulf %11, %11 : vector<8x128xf32>
    %20 = arith.addf %18, %19 : vector<8x128xf32>
    %21 = arith.mulf %17, %17 : vector<8x128xf32>
    %22 = arith.addf %20, %21 : vector<8x128xf32>
    %23 = math.rsqrt %22 : vector<8x128xf32>
    %24 = arith.mulf %5, %23 : vector<8x128xf32>
    %25 = arith.mulf %11, %23 : vector<8x128xf32>
    %26 = arith.mulf %17, %23 : vector<8x128xf32>
    %cst = arith.constant -1.7724539 : f32
    %27 = vector.broadcast %cst : f32 to vector<8x128xf32>
    %28 = arith.mulf %27, %25 : vector<8x128xf32>
    %cst_9 = arith.constant 1.7724539 : f32
    %29 = vector.broadcast %cst_9 : f32 to vector<8x128xf32>
    %30 = arith.mulf %29, %26 : vector<8x128xf32>
    %cst_10 = arith.constant -1.7724539 : f32
    %31 = vector.broadcast %cst_10 : f32 to vector<8x128xf32>
    %32 = arith.mulf %31, %24 : vector<8x128xf32>
    %33 = arith.mulf %24, %25 : vector<8x128xf32>
    %cst_11 = arith.constant 2.42703247 : f32
    %34 = vector.broadcast %cst_11 : f32 to vector<8x128xf32>
    %35 = arith.mulf %34, %33 : vector<8x128xf32>
    %36 = arith.mulf %25, %26 : vector<8x128xf32>
    %cst_12 = arith.constant -2.42703247 : f32
    %37 = vector.broadcast %cst_12 : f32 to vector<8x128xf32>
    %38 = arith.mulf %37, %36 : vector<8x128xf32>
    %cst_13 = arith.constant 3.000000e+00 : f32
    %39 = vector.broadcast %cst_13 : f32 to vector<8x128xf32>
    %40 = arith.mulf %39, %26 : vector<8x128xf32>
    %41 = arith.mulf %40, %26 : vector<8x128xf32>
    %cst_14 = arith.constant 1.000000e+00 : f32
    %42 = vector.broadcast %cst_14 : f32 to vector<8x128xf32>
    %43 = arith.subf %41, %42 : vector<8x128xf32>
    %cst_15 = arith.constant 0.700623929 : f32
    %44 = vector.broadcast %cst_15 : f32 to vector<8x128xf32>
    %45 = arith.mulf %44, %43 : vector<8x128xf32>
    %46 = arith.mulf %24, %26 : vector<8x128xf32>
    %cst_16 = arith.constant -2.42703247 : f32
    %47 = vector.broadcast %cst_16 : f32 to vector<8x128xf32>
    %48 = arith.mulf %47, %46 : vector<8x128xf32>
    %49 = arith.mulf %24, %24 : vector<8x128xf32>
    %50 = arith.mulf %25, %25 : vector<8x128xf32>
    %51 = arith.subf %49, %50 : vector<8x128xf32>
    %cst_17 = arith.constant 1.21351624 : f32
    %52 = vector.broadcast %cst_17 : f32 to vector<8x128xf32>
    %53 = arith.mulf %52, %51 : vector<8x128xf32>
    %54 = arith.index_cast %arg0 : i32 to index
    %c0_18 = arith.constant 0 : index
    %55 = memref.load %arg2[%54, %c0_18] : memref<2x30xf32, #tpu.memory_space<smem>>
    %cst_19 = arith.constant 0.886226952 : f32
    %56 = arith.mulf %55, %cst_19 : f32
    %57 = arith.index_cast %arg0 : i32 to index
    %c1_20 = arith.constant 1 : index
    %58 = memref.load %arg2[%57, %c1_20] : memref<2x30xf32, #tpu.memory_space<smem>>
    %59 = vector.broadcast %58 : f32 to vector<8x128xf32>
    %60 = arith.mulf %59, %28 : vector<8x128xf32>
    %61 = vector.broadcast %56 : f32 to vector<8x128xf32>
    %62 = arith.addf %61, %60 : vector<8x128xf32>
    %63 = arith.index_cast %arg0 : i32 to index
    %c2_21 = arith.constant 2 : index
    %64 = memref.load %arg2[%63, %c2_21] : memref<2x30xf32, #tpu.memory_space<smem>>
    %65 = vector.broadcast %64 : f32 to vector<8x128xf32>
    %66 = arith.mulf %65, %30 : vector<8x128xf32>
    %67 = arith.addf %62, %66 : vector<8x128xf32>
    %68 = arith.index_cast %arg0 : i32 to index
    %c3 = arith.constant 3 : index
    %69 = memref.load %arg2[%68, %c3] : memref<2x30xf32, #tpu.memory_space<smem>>
    %70 = vector.broadcast %69 : f32 to vector<8x128xf32>
    %71 = arith.mulf %70, %32 : vector<8x128xf32>
    %72 = arith.addf %67, %71 : vector<8x128xf32>
    %73 = arith.index_cast %arg0 : i32 to index
    %c4 = arith.constant 4 : index
    %74 = memref.load %arg2[%73, %c4] : memref<2x30xf32, #tpu.memory_space<smem>>
    %75 = vector.broadcast %74 : f32 to vector<8x128xf32>
    %76 = arith.mulf %75, %35 : vector<8x128xf32>
    %77 = arith.addf %72, %76 : vector<8x128xf32>
    %78 = arith.index_cast %arg0 : i32 to index
    %c5 = arith.constant 5 : index
    %79 = memref.load %arg2[%78, %c5] : memref<2x30xf32, #tpu.memory_space<smem>>
    %80 = vector.broadcast %79 : f32 to vector<8x128xf32>
    %81 = arith.mulf %80, %38 : vector<8x128xf32>
    %82 = arith.addf %77, %81 : vector<8x128xf32>
    %83 = arith.index_cast %arg0 : i32 to index
    %c6 = arith.constant 6 : index
    %84 = memref.load %arg2[%83, %c6] : memref<2x30xf32, #tpu.memory_space<smem>>
    %85 = vector.broadcast %84 : f32 to vector<8x128xf32>
    %86 = arith.mulf %85, %45 : vector<8x128xf32>
    %87 = arith.addf %82, %86 : vector<8x128xf32>
    %88 = arith.index_cast %arg0 : i32 to index
    %c7 = arith.constant 7 : index
    %89 = memref.load %arg2[%88, %c7] : memref<2x30xf32, #tpu.memory_space<smem>>
    %90 = vector.broadcast %89 : f32 to vector<8x128xf32>
    %91 = arith.mulf %90, %48 : vector<8x128xf32>
    %92 = arith.addf %87, %91 : vector<8x128xf32>
    %93 = arith.index_cast %arg0 : i32 to index
    %c8 = arith.constant 8 : index
    %94 = memref.load %arg2[%93, %c8] : memref<2x30xf32, #tpu.memory_space<smem>>
    %95 = vector.broadcast %94 : f32 to vector<8x128xf32>
    %96 = arith.mulf %95, %53 : vector<8x128xf32>
    %97 = arith.addf %92, %96 : vector<8x128xf32>
    %c0_22 = arith.constant 0 : index
    %c0_23 = arith.constant 0 : index
    %c0_24 = arith.constant 0 : index
    %c0_25 = arith.constant 0 : index
    %98 = vector.load %arg4[%c0_22, %c0_23, %c0_24, %c0_25] : memref<1x3x8x128xf32, #tpu.memory_space<vmem>>, vector<1x1x8x128xf32>
    %99 = vector.shape_cast %98 : vector<1x1x8x128xf32> to vector<8x128xf32>
    %100 = arith.mulf %99, %97 : vector<8x128xf32>
    %c0_26 = arith.constant 0 : index
    %c0_27 = arith.constant 0 : index
    %c0_28 = arith.constant 0 : index
    %c0_29 = arith.constant 0 : index
    %101 = vector.load %arg5[%c0_26, %c0_27, %c0_28, %c0_29] : memref<1x3x8x128xf32, #tpu.memory_space<vmem>>, vector<1x1x8x128xf32>
    %102 = vector.shape_cast %101 : vector<1x1x8x128xf32> to vector<8x128xf32>
    %103 = vector.shape_cast %100 : vector<8x128xf32> to vector<1x1x8x128xf32>
    tpu.vector_store %arg5[%c0_26, %c0_27, %c0_28, %c0_29], %103 {strides = array<i32>} : memref<1x3x8x128xf32, #tpu.memory_space<vmem>>, vector<1x1x8x128xf32>,
    %104 = arith.index_cast %arg0 : i32 to index
    %c9 = arith.constant 9 : index
    %105 = memref.load %arg2[%104, %c9] : memref<2x30xf32, #tpu.memory_space<smem>>
    %cst_30 = arith.constant 0.886226952 : f32
    %106 = arith.mulf %105, %cst_30 : f32
    %107 = arith.index_cast %arg0 : i32 to index
    %c10 = arith.constant 10 : index
    %108 = memref.load %arg2[%107, %c10] : memref<2x30xf32, #tpu.memory_space<smem>>
    %109 = vector.broadcast %108 : f32 to vector<8x128xf32>
    %110 = arith.mulf %109, %28 : vector<8x128xf32>
    %111 = vector.broadcast %106 : f32 to vector<8x128xf32>
    %112 = arith.addf %111, %110 : vector<8x128xf32>
    %113 = arith.index_cast %arg0 : i32 to index
    %c11 = arith.constant 11 : index
    %114 = memref.load %arg2[%113, %c11] : memref<2x30xf32, #tpu.memory_space<smem>>
    %115 = vector.broadcast %114 : f32 to vector<8x128xf32>
    %116 = arith.mulf %115, %30 : vector<8x128xf32>
    %117 = arith.addf %112, %116 : vector<8x128xf32>
    %118 = arith.index_cast %arg0 : i32 to index
    %c12 = arith.constant 12 : index
    %119 = memref.load %arg2[%118, %c12] : memref<2x30xf32, #tpu.memory_space<smem>>
    %120 = vector.broadcast %119 : f32 to vector<8x128xf32>
    %121 = arith.mulf %120, %32 : vector<8x128xf32>
    %122 = arith.addf %117, %121 : vector<8x128xf32>
    %123 = arith.index_cast %arg0 : i32 to index
    %c13 = arith.constant 13 : index
    %124 = memref.load %arg2[%123, %c13] : memref<2x30xf32, #tpu.memory_space<smem>>
    %125 = vector.broadcast %124 : f32 to vector<8x128xf32>
    %126 = arith.mulf %125, %35 : vector<8x128xf32>
    %127 = arith.addf %122, %126 : vector<8x128xf32>
    %128 = arith.index_cast %arg0 : i32 to index
    %c14 = arith.constant 14 : index
    %129 = memref.load %arg2[%128, %c14] : memref<2x30xf32, #tpu.memory_space<smem>>
    %130 = vector.broadcast %129 : f32 to vector<8x128xf32>
    %131 = arith.mulf %130, %38 : vector<8x128xf32>
    %132 = arith.addf %127, %131 : vector<8x128xf32>
    %133 = arith.index_cast %arg0 : i32 to index
    %c15 = arith.constant 15 : index
    %134 = memref.load %arg2[%133, %c15] : memref<2x30xf32, #tpu.memory_space<smem>>
    %135 = vector.broadcast %134 : f32 to vector<8x128xf32>
    %136 = arith.mulf %135, %45 : vector<8x128xf32>
    %137 = arith.addf %132, %136 : vector<8x128xf32>
    %138 = arith.index_cast %arg0 : i32 to index
    %c16 = arith.constant 16 : index
    %139 = memref.load %arg2[%138, %c16] : memref<2x30xf32, #tpu.memory_space<smem>>
    %140 = vector.broadcast %139 : f32 to vector<8x128xf32>
    %141 = arith.mulf %140, %48 : vector<8x128xf32>
    %142 = arith.addf %137, %141 : vector<8x128xf32>
    %143 = arith.index_cast %arg0 : i32 to index
    %c17 = arith.constant 17 : index
    %144 = memref.load %arg2[%143, %c17] : memref<2x30xf32, #tpu.memory_space<smem>>
    %145 = vector.broadcast %144 : f32 to vector<8x128xf32>
    %146 = arith.mulf %145, %53 : vector<8x128xf32>
    %147 = arith.addf %142, %146 : vector<8x128xf32>
    %c0_31 = arith.constant 0 : index
    %c1_32 = arith.constant 1 : index
    %c0_33 = arith.constant 0 : index
    %c0_34 = arith.constant 0 : index
    %148 = vector.load %arg4[%c0_31, %c1_32, %c0_33, %c0_34] : memref<1x3x8x128xf32, #tpu.memory_space<vmem>>, vector<1x1x8x128xf32>
    %149 = vector.shape_cast %148 : vector<1x1x8x128xf32> to vector<8x128xf32>
    %150 = arith.mulf %149, %147 : vector<8x128xf32>
    %c0_35 = arith.constant 0 : index
    %c1_36 = arith.constant 1 : index
    %c0_37 = arith.constant 0 : index
    %c0_38 = arith.constant 0 : index
    %151 = vector.load %arg5[%c0_35, %c1_36, %c0_37, %c0_38] : memref<1x3x8x128xf32, #tpu.memory_space<vmem>>, vector<1x1x8x128xf32>
    %152 = vector.shape_cast %151 : vector<1x1x8x128xf32> to vector<8x128xf32>
    %153 = vector.shape_cast %150 : vector<8x128xf32> to vector<1x1x8x128xf32>
    tpu.vector_store %arg5[%c0_35, %c1_36, %c0_37, %c0_38], %153 {strides = array<i32>} : memref<1x3x8x128xf32, #tpu.memory_space<vmem>>, vector<1x1x8x128xf32>,
    %154 = arith.index_cast %arg0 : i32 to index
    %c18 = arith.constant 18 : index
    %155 = memref.load %arg2[%154, %c18] : memref<2x30xf32, #tpu.memory_space<smem>>
    %cst_39 = arith.constant 0.886226952 : f32
    %156 = arith.mulf %155, %cst_39 : f32
    %157 = arith.index_cast %arg0 : i32 to index
    %c19 = arith.constant 19 : index
    %158 = memref.load %arg2[%157, %c19] : memref<2x30xf32, #tpu.memory_space<smem>>
    %159 = vector.broadcast %158 : f32 to vector<8x128xf32>
    %160 = arith.mulf %159, %28 : vector<8x128xf32>
    %161 = vector.broadcast %156 : f32 to vector<8x128xf32>
    %162 = arith.addf %161, %160 : vector<8x128xf32>
    %163 = arith.index_cast %arg0 : i32 to index
    %c20 = arith.constant 20 : index
    %164 = memref.load %arg2[%163, %c20] : memref<2x30xf32, #tpu.memory_space<smem>>
    %165 = vector.broadcast %164 : f32 to vector<8x128xf32>
    %166 = arith.mulf %165, %30 : vector<8x128xf32>
    %167 = arith.addf %162, %166 : vector<8x128xf32>
    %168 = arith.index_cast %arg0 : i32 to index
    %c21 = arith.constant 21 : index
    %169 = memref.load %arg2[%168, %c21] : memref<2x30xf32, #tpu.memory_space<smem>>
    %170 = vector.broadcast %169 : f32 to vector<8x128xf32>
    %171 = arith.mulf %170, %32 : vector<8x128xf32>
    %172 = arith.addf %167, %171 : vector<8x128xf32>
    %173 = arith.index_cast %arg0 : i32 to index
    %c22 = arith.constant 22 : index
    %174 = memref.load %arg2[%173, %c22] : memref<2x30xf32, #tpu.memory_space<smem>>
    %175 = vector.broadcast %174 : f32 to vector<8x128xf32>
    %176 = arith.mulf %175, %35 : vector<8x128xf32>
    %177 = arith.addf %172, %176 : vector<8x128xf32>
    %178 = arith.index_cast %arg0 : i32 to index
    %c23 = arith.constant 23 : index
    %179 = memref.load %arg2[%178, %c23] : memref<2x30xf32, #tpu.memory_space<smem>>
    %180 = vector.broadcast %179 : f32 to vector<8x128xf32>
    %181 = arith.mulf %180, %38 : vector<8x128xf32>
    %182 = arith.addf %177, %181 : vector<8x128xf32>
    %183 = arith.index_cast %arg0 : i32 to index
    %c24 = arith.constant 24 : index
    %184 = memref.load %arg2[%183, %c24] : memref<2x30xf32, #tpu.memory_space<smem>>
    %185 = vector.broadcast %184 : f32 to vector<8x128xf32>
    %186 = arith.mulf %185, %45 : vector<8x128xf32>
    %187 = arith.addf %182, %186 : vector<8x128xf32>
    %188 = arith.index_cast %arg0 : i32 to index
    %c25 = arith.constant 25 : index
    %189 = memref.load %arg2[%188, %c25] : memref<2x30xf32, #tpu.memory_space<smem>>
    %190 = vector.broadcast %189 : f32 to vector<8x128xf32>
    %191 = arith.mulf %190, %48 : vector<8x128xf32>
    %192 = arith.addf %187, %191 : vector<8x128xf32>
    %193 = arith.index_cast %arg0 : i32 to index
    %c26 = arith.constant 26 : index
    %194 = memref.load %arg2[%193, %c26] : memref<2x30xf32, #tpu.memory_space<smem>>
    %195 = vector.broadcast %194 : f32 to vector<8x128xf32>
    %196 = arith.mulf %195, %53 : vector<8x128xf32>
    %197 = arith.addf %192, %196 : vector<8x128xf32>
    %c0_40 = arith.constant 0 : index
    %c2_41 = arith.constant 2 : index
    %c0_42 = arith.constant 0 : index
    %c0_43 = arith.constant 0 : index
    %198 = vector.load %arg4[%c0_40, %c2_41, %c0_42, %c0_43] : memref<1x3x8x128xf32, #tpu.memory_space<vmem>>, vector<1x1x8x128xf32>
    %199 = vector.shape_cast %198 : vector<1x1x8x128xf32> to vector<8x128xf32>
    %200 = arith.mulf %199, %197 : vector<8x128xf32>
    %c0_44 = arith.constant 0 : index
    %c2_45 = arith.constant 2 : index
    %c0_46 = arith.constant 0 : index
    %c0_47 = arith.constant 0 : index
    %201 = vector.load %arg5[%c0_44, %c2_45, %c0_46, %c0_47] : memref<1x3x8x128xf32, #tpu.memory_space<vmem>>, vector<1x1x8x128xf32>
    %202 = vector.shape_cast %201 : vector<1x1x8x128xf32> to vector<8x128xf32>
    %203 = vector.shape_cast %200 : vector<8x128xf32> to vector<1x1x8x128xf32>
    tpu.vector_store %arg5[%c0_44, %c2_45, %c0_46, %c0_47], %203 {strides = array<i32>} : memref<1x3x8x128xf32, #tpu.memory_space<vmem>>, vector<1x1x8x128xf32>,
    return
  }
  func.func @transform_0(%arg0: i32, %arg1: i32, %arg2: memref<2x30xf32, #tpu.memory_space<smem>>) -> (i32, i32, i32, i32) {
    %c0_i32 = arith.constant 0 : i32
    %c0_i32_0 = arith.constant 0 : i32
    %c0_i32_1 = arith.constant 0 : i32
    return %arg0, %c0_i32, %arg1, %c0_i32_0 : i32, i32, i32, i32
  }
  func.func @transform_1(%arg0: i32, %arg1: i32, %arg2: memref<2x30xf32, #tpu.memory_space<smem>>) -> (i32, i32, i32, i32) {
    %c0_i32 = arith.constant 0 : i32
    %c0_i32_0 = arith.constant 0 : i32
    %c0_i32_1 = arith.constant 0 : i32
    return %arg0, %c0_i32, %arg1, %c0_i32_0 : i32, i32, i32, i32
  }
  func.func @transform_2(%arg0: i32, %arg1: i32, %arg2: memref<2x30xf32, #tpu.memory_space<smem>>) -> (i32, i32, i32, i32) {
    %c0_i32 = arith.constant 0 : i32
    %c0_i32_0 = arith.constant 0 : i32
    %c0_i32_1 = arith.constant 0 : i32
    return %arg0, %c0_i32, %arg1, %c0_i32_0 : i32, i32, i32, i32
  }
}

</mosaic_0001>

<bundles_post_ra>
// kernel: render_3dmm_forward.2
= control target key start
LH: loop header
LB: loop body
LE: loop exit
PB: predicated region body
PF: predicated region fallthrough
CT: control target
= control target key end

     0   :  { %s470_s9 = smov 0   ;;  %s472_s10 = smov 0   ;;  %s514_s0 = inlined_call_operand.vmem [shape: f32[2,9,8,128], index: 0, kind: input, shape index: {}]   ;;  %s515_s1 = inlined_call_operand.vmem [shape: f32[2,3,8,128], index: 1, kind: output, shape index: {0}]   ;;  %s516_s2 = inlined_call_operand.vmem [shape: f32[2,3,8,128], index: 2, kind: output, shape index: {1}]  }
   0x1   :  { %s474_s11 = smov 0  }
   0x2 LB: > { %s25_s12 = sadd.s32 1, %s449_s10  ;;  %p384_p0 = scmp.ge.s32.totalorder %s453_s11, 1  ;;  %s453_s11 = sphi %s474_s11, %s13_s11   ;;  %s449_s10 = sphi %s472_s10, %s518_s10   ;;  %s445_s9 = sphi %s470_s9, %s517_s9  }
   0x3   : > { %p27_p1 = scmp.ge.s32.totalorder %s25_s12, 2  ;;  %p134_p2 = scmp.lt.s32.totalorder %s453_s11, 3 }
   0x5   : > { %s520_s12 = smov (%p27_p1, %s25_s12), 0  ;;  %p135_p3 = pnand %p384_p0, %p134_p2 }
   0x6   : > { %p167_p4 = scmp.lt.s32.totalorder (!%p135_p3), %s445_s9, 1 }
   0x7   : > { %138 = sbr.rel (%p135_p3) target bundleno = 42 (0x2a), region = 24 }
   0xe   : > { %s522_s9 = smov (!%p167_p4, %s445_s9), 1 }
   0xf   : > { %s404_s13 = smul.u32 72, %s522_s9 }
  0x10   : > { %s405_s17 = smul.u32 24, %s522_s9 }
  0x11   : > { %s174_s16 = scalar_lea.vmem %s514_s0, %s404_s13 }
  0x12   : > { %v388_v0 = vld [vmem:[%s174_s16 + $0x8] sm:$0xff]  ;;  %v389_v1 = vld [vmem:[%s174_s16 + $0x10] sm:$0xff]  ;;  %v391_v2 = vld [vmem:[%s174_s16 + $0x20] sm:$0xff]  ;;  %s182_s20 = scalar_lea.vmem %s515_s1, %s405_s17  ;;  %s187_s23 = scalar_lea.vmem %s516_s2, %s405_s17 }
  0x13   : > { %v392_v3 = vld [vmem:[%s174_s16 + $0x28] sm:$0xff]  ;;  %v394_v4 = vld [vmem:[%s174_s16 + $0x38] sm:$0xff]  ;;  %v395_v5 = vld [vmem:[%s174_s16 + $0x40] sm:$0xff]  ;;  %v213_v6 = vsub.f32 %v391_v2, %v388_v0 }
  0x14   : > { %v214_v7 = vsub.f32 %v392_v3, %v389_v1  ;;  %v216_v8 = vsub.f32 %v394_v4, %v388_v0  ;;  %v217_v9 = vsub.f32 %v395_v5, %v389_v1  ;;  %v195_v10 = vld [vmem:[%s174_s16] sm:$0xff]  ;;  %v390_v11 = vld [vmem:[%s174_s16 + $0x18] sm:$0xff]  ;;  %v393_v12 = vld [vmem:[%s174_s16 + $0x30] sm:$0xff] }
  0x15   : > { %v212_v13 = vsub.f32 %v390_v11, %v195_v10  ;;  %v215_v14 = vsub.f32 %v393_v12, %v195_v10 }
  0x16   : > { %v218_v15 = vmul.f32 %v217_v9, %v213_v6  ;;  %v219_v16 = vmul.f32 %v216_v8, %v214_v7 }
  0x17   : > { %v221_v17 = vmul.f32 %v215_v14, %v214_v7  ;;  %v222_v18 = vmul.f32 %v217_v9, %v212_v13  ;;  %v224_v19 = vmul.f32 %v216_v8, %v212_v13  ;;  %v225_v20 = vmul.f32 %v215_v14, %v213_v6 }
  0x18   : > { %v220_v21 = vsub.f32 %v218_v15, %v219_v16 }
  0x19   : > { %v223_v22 = vsub.f32 %v221_v17, %v222_v18  ;;  %v226_v23 = vsub.f32 %v224_v19, %v225_v20 }
  0x1a   : > { %227 = vst [vmem:[%s182_s20] sm:$0xff] %v220_v21  ;;  %v233_v24 = vmul.f32 %v220_v21, %v220_v21 }
  0x1b   : > { %396 = vst [vmem:[%s182_s20 + $0x8] sm:$0xff] %v223_v22  ;;  %v244_v25 = vmul.f32 %v223_v22, %v223_v22  ;;  %397 = vst [vmem:[%s182_s20 + $0x10] sm:$0xff] %v226_v23  ;;  %v255_v26 = vmul.f32 %v226_v23, %v226_v23 }
  0x1c   : > { %v234_v27 = vrot.slane %v233_v24, 4 }
  0x1d   : > { %v245_v28 = vrot.slane %v244_v25, 4  ;;  %v256_v29 = vrot.slane %v255_v26, 4 }
  0x1e   : > { %v235_v30 = vadd.f32 %v234_v27, %v233_v24 }
  0x1f   : > { %v246_v31 = vadd.f32 %v245_v28, %v244_v25  ;;  %v257_v32 = vadd.f32 %v256_v29, %v255_v26 }
  0x20   : > { %v236_v33 = vrot.slane %v235_v30, 2 }
  0x21   : > { %v247_v34 = vrot.slane %v246_v31, 2  ;;  %v258_v35 = vrot.slane %v257_v32, 2 }
  0x22   : > { %v237_v36 = vadd.f32 %v236_v33, %v235_v30 }
  0x23   : > { %v248_v37 = vadd.f32 %v247_v34, %v246_v31  ;;  %v259_v38 = vadd.f32 %v258_v35, %v257_v32 }
  0x24   : > { %v238_v39 = vrot.slane %v237_v36, 1 }
  0x25   : > { %v249_v40 = vrot.slane %v248_v37, 1  ;;  %v260_v41 = vrot.slane %v259_v38, 1 }
  0x26   : > { %v239_v42 = vadd.f32 %v238_v39, %v237_v36 }
  0x27   : > { %v250_v43 = vadd.f32 %v249_v40, %v248_v37  ;;  %v261_v44 = vadd.f32 %v260_v41, %v259_v38 }
  0x28   : > { %241 = vst [vmem:[%s187_s23] sm:$0xff] %v239_v42 }
  0x29   : > { %399 = vst [vmem:[%s187_s23 + $0x8] sm:$0xff] %v250_v43  ;;  %401 = vst [vmem:[%s187_s23 + $0x10] sm:$0xff] %v261_v44 }
  0x2a PF: > { %s13_s11 = sadd.s32 1, %s453_s11   ;;  %s517_s9 = smov %s449_s10 }
  0x2b   : > { %p10_p5 = scmp.ge.s32.totalorder %s13_s11, 4   ;;  %s518_s10 = smov %s520_s12 }
  0x2d   :  { %12 = sbr.rel (!%p10_p5) target bundleno = 2 (0x2), region = 82 }

// kernel: render_3dmm_forward.3
= control target key start
LH: loop header
LB: loop body
LE: loop exit
PB: predicated region body
PF: predicated region fallthrough
CT: control target
= control target key end

     0   :  { %s793_s0 = inlined_call_operand.vmem [shape: f32[2,30], index: 0, kind: input, shape index: {}]   ;;  %s794_s1 = inlined_call_operand.vmem [shape: f32[2,3,8,128], index: 1, kind: input, shape index: {}]   ;;  %s795_s2 = inlined_call_operand.vmem [shape: f32[2,3,8,128], index: 2, kind: input, shape index: {}]   ;;  %s796_s3 = inlined_call_operand.vmem [shape: f32[2,3,8,128], index: 3, kind: output, shape index: {}]  }
   0x1   :  { %797 = sst [smem:[#allocation5_spill]] %s794_s1  ;;  %s8_s14 = sshll.u32 %s793_s0, 4  ;;  %s9_s14 = int_to_ptr.vmem [resolvable:$true] %s8_s14 }
   0x2   :  { %s548_s15 = scalar_lea.vmem %s9_s14, 32  ;;  %p553_p1 = scmp.lt.s32.totalorder %s9_s14, %s9_s14 }
   0x3   :  { %p549_p0 = scmp.ne.s32.totalorder %s9_s14, %s548_s15  ;;  %p554_p2 = scmp.lt.s32.totalorder %s548_s15, %s548_s15 }
   0x5   :  { %p555_p3 = por %p554_p2, %p553_p1 }
   0x7   :  { %p556_p4 = pnand %p555_p3, %p549_p0 }
   0x9   :  { %559 = shalt.err (!%p556_p4)  }
   0xa   :  { %s586_s16 = smov [#allocation3]  }
   0xb   :  { %11 = dma.vmem_to_smem %s9_s14, 32, %s586_s16, [#allocation2] }
   0xc   :  { %572 = dma.done.wait [#allocation2], 32 }
   0xd   :  { %573 = vsyncadd [#allocation2], 4294967264 }
   0xe   :  { %13 = sfence }
   0xf   :  { %s610_s17 = smov 0   ;;  %s612_s18 = smov 0  }
  0x10   :  { %s614_s19 = smov 0  }
  0x11 LB: > { %s31_s0 = sadd.s32 1, %s580_s18  ;;  %p506_p5 = scmp.ge.s32.totalorder %s584_s19, 1  ;;  %s584_s19 = sphi %s614_s19, %s19_s19   ;;  %s580_s18 = sphi %s612_s18, %s800_s18   ;;  %s576_s17 = sphi %s610_s17, %s799_s17  }
  0x12   : > { %p33_p6 = scmp.ge.s32.totalorder %s31_s0, 2  ;;  %p153_p7 = scmp.lt.s32.totalorder %s584_s19, 3 }
  0x14   : > { %s802_s0 = smov (%p33_p6, %s31_s0), 0  ;;  %p154_p8 = pnand %p506_p5, %p153_p7 }
  0x15   : > { %p189_p9 = scmp.lt.s32.totalorder (!%p154_p8), %s576_s17, 1  ;;  %s628_s20 = sshll.u32 (!%p154_p8), %s576_s17, 7 }
  0x16   : > { %157 = sbr.rel (%p154_p8) target bundleno = 85 (0x55), region = 28  ;;  %s215_s21 = sadd.s32 (!%p154_p8), 27, %s628_s20 }
  0x17   : > { %s221_s22 = sadd.s32 (!%p154_p8), 28, %s628_s20  ;;  %s216_s23 = sld [smem:[#allocation3 + %s215_s21]] (!%p154_p8) }
  0x18   : > { %s222_s24 = sld [smem:[#allocation3 + %s221_s22]] (!%p154_p8)  ;;  %s227_s26 = sadd.s32 (!%p154_p8), 29, %s628_s20 }
  0x19   : > { %s228_s27 = sld [smem:[#allocation3 + %s227_s26]] (!%p154_p8)  ;;  %s259_s4 = sadd.s32 (!%p154_p8), 1, %s628_s20 }
  0x1a   : > { %s798_s1 = sld [smem:[#allocation5_spill]] (!%p154_p8)  ;;  %s265_s5 = sadd.s32 (!%p154_p8), 2, %s628_s20 }
  0x1b   : > { %s270_s6 = sadd.s32 (!%p154_p8), 3, %s628_s20  ;;  %s275_s7 = sadd.s32 (!%p154_p8), 4, %s628_s20 }
  0x1c   : > { %s644_s8 = sld [smem:[#allocation3 + %s628_s20]] (!%p154_p8)  ;;  %s280_s9 = sadd.s32 (!%p154_p8), 5, %s628_s20 }
  0x1d   : > { %s804_s17 = smov (!%p189_p9, %s576_s17), 1  ;;  %v217_v2 = vstv %s216_s23  ;;  %s647_s10 = sld [smem:[#allocation3 + %s259_s4]] }
  0x1e   : > { %s632_s25 = smul.u32 24, %s804_s17  ;;  %v223_v3 = vstv %s222_s24  ;;  %s649_s11 = sld [smem:[#allocation3 + %s265_s5]] }
  0x1f   : > { %v229_v7 = vstv %s228_s27  ;;  %s651_s12 = sld [smem:[#allocation3 + %s270_s6]]  ;;  %s285_s15 = sadd.s32 6, %s628_s20 }
  0x20   : > { %s196_s30 = scalar_lea.vmem %s798_s1, %s632_s25  ;;  %s653_s13 = sld [smem:[#allocation3 + %s275_s7]] }
  0x21   : > { %v213_v0 = vld [vmem:[%s196_s30] sm:$0xff]  ;;  %v511_v1 = vld [vmem:[%s196_s30 + $0x8] sm:$0xff]  ;;  %v512_v4 = vld [vmem:[%s196_s30 + $0x10] sm:$0xff]  ;;  %s655_s14 = sld [smem:[#allocation3 + %s280_s9]]  ;;  %s290_s16 = sadd.s32 7, %s628_s20 }
  0x22   : > { %v218_v5 = vmul.f32 %v217_v2, %v213_v0  ;;  %v224_v6 = vmul.f32 %v511_v1, %v223_v3  ;;  %v230_v8 = vmul.f32 %v512_v4, %v229_v7  ;;  %s303_s17 = sadd.s32 9, %s628_s20  ;;  %s295_s21 = sadd.s32 8, %s628_s20 }
  0x23   : > { %s306_s22 = sadd.s32 10, %s628_s20  ;;  %s662_s23 = sld [smem:[#allocation3 + %s303_s17]]  ;;  %v261_v14 = vstv %s647_s10 }
  0x24   : > { %v231_v9 = vmul.f32 %v218_v5, %v218_v5  ;;  %v232_v10 = vmul.f32 %v224_v6, %v224_v6  ;;  %v234_v12 = vmul.f32 %v230_v8, %v230_v8  ;;  %s312_s24 = sadd.s32 11, %s628_s20  ;;  %s665_s26 = sld [smem:[#allocation3 + %s285_s15]]  ;;  %v267_v16 = vstv %s649_s11 }
  0x25   : > { %s317_s27 = sadd.s32 12, %s628_s20  ;;  %s668_s28 = sld [smem:[#allocation3 + %s290_s16]]  ;;  %v272_v17 = vstv %s651_s12 }
  0x26   : > { %v233_v11 = vadd.f32 %v232_v10, %v231_v9  ;;  %s670_s29 = sld [smem:[#allocation3 + %s295_s21]]  ;;  %s322_s6 = sadd.s32 13, %s628_s20  ;;  %v277_v19 = vstv %s653_s13 }
  0x27   : > { %s672_s30 = sld [smem:[#allocation3 + %s306_s22]]  ;;  %s258_s7 = smul.f32 0.88622695, %s644_s8  ;;  %v282_v20 = vstv %s655_s14 }
  0x28   : > { %v235_v13 = vadd.f32 %v234_v12, %v233_v11  ;;  %s674_s4 = sld [smem:[#allocation3 + %s312_s24]]  ;;  %s327_s9 = sadd.s32 14, %s628_s20 }
  0x29   : > { %s676_s5 = sld [smem:[#allocation3 + %s317_s27]]  ;;  %s332_s15 = sadd.s32 15, %s628_s20  ;;  %v263_v15 = vstv %s258_s7 }
  0x2a   : > { %546 = vrsqrt.f32 %v235_v13  ;;  %s337_s16 = sadd.s32 16, %s628_s20  ;;  %s683_s17 = sld [smem:[#allocation3 + %s322_s6]]  ;;  %v287_v21 = vstv %s665_s26 }
  0x2b   : > { %s352_s21 = sadd.s32 18, %s628_s20  ;;  %s305_s1 = smul.f32 0.88622695, %s662_s23  ;;  %v292_v22 = vstv %s668_s28 }
  0x2c   : > { %s687_s22 = sld [smem:[#allocation3 + %s327_s9]]  ;;  %s342_s10 = sadd.s32 17, %s628_s20  ;;  %v297_v26 = vstv %s670_s29 }
  0x2d   : > { %s692_s8 = sld [smem:[#allocation3 + %s332_s15]]  ;;  %s355_s11 = sadd.s32 19, %s628_s20  ;;  %v308_v27 = vstv %s672_s30  ;;  %v310_v28 = vstv %s305_s1 }
  0x2e   : > { %s694_s24 = sld [smem:[#allocation3 + %s337_s16]]  ;;  %s361_s12 = sadd.s32 20, %s628_s20  ;;  %v314_v29 = vstv %s674_s4 }
  0x2f   : > { %s701_s23 = sld [smem:[#allocation3 + %s352_s21]]  ;;  %v319_v30 = vstv %s676_s5  ;;  %s366_s27 = sadd.s32 21, %s628_s20 }
  0x30   : > { %s371_s13 = sadd.s32 22, %s628_s20  ;;  %s715_s14 = sld [smem:[#allocation3 + %s342_s10]]  ;;  %v324_v46 = vstv %s683_s17 }
  0x31   : > { %s717_s28 = sld [smem:[#allocation3 + %s355_s11]]  ;;  %s376_s30 = sadd.s32 23, %s628_s20 }
  0x32   : > { %s722_s1 = sld [smem:[#allocation3 + %s361_s12]]  ;;  %s381_s6 = sadd.s32 24, %s628_s20  ;;  %v329_v53 = vstv %s687_s22 }
  0x33   : > { %s730_s4 = sld [smem:[#allocation3 + %s366_s27]]  ;;  %v334_v54 = vstv %s692_s8  ;;  %s386_s15 = sadd.s32 25, %s628_s20 }
  0x34   : > { %v547_v18 = vpop.eup %546  ;;  %s732_s5 = sld [smem:[#allocation3 + %s371_s13]]  ;;  %v339_v62 = vstv %s694_s24  ;;  %s391_s17 = sadd.s32 26, %s628_s20 }
  0x35   : > { %v237_v23 = vmul.f32 %v547_v18, %v218_v5  ;;  %v238_v24 = vmul.f32 %v547_v18, %v224_v6  ;;  %v239_v25 = vmul.f32 %v547_v18, %v230_v8  ;;  %s739_s7 = sld [smem:[#allocation3 + %s376_s30]]  ;;  %s354_s9 = smul.f32 0.88622695, %s701_s23 }
  0x36   : > { %s748_s16 = sld [smem:[#allocation3 + %s381_s6]]  ;;  %v344_v5 = vstv %s715_s14  ;;  %s204_s8 = scalar_lea.vmem %s795_s2, %s632_s25 }
  0x37   : > { %v240_v31 = vmul.f32 -1.7724539, %v238_v24  ;;  %v711_v32 = vmul.f32 1.7724539, %v239_v25  ;;  %v713_v33 = vmul.f32 -1.7724539, %v237_v23  ;;  %v243_v34 = vmul.f32 %v238_v24, %v237_v23  ;;  %s212_s10 = scalar_lea.vmem %s796_s3, %s632_s25 }
  0x38   : > { %v245_v35 = vmul.f32 %v239_v25, %v238_v24  ;;  %v247_v36 = vmul.f32 3.0, %v239_v25  ;;  %v251_v37 = vmul.f32 %v239_v25, %v237_v23  ;;  %v253_v38 = vmul.f32 %v237_v23, %v237_v23  ;;  %s757_s21 = sld [smem:[#allocation3 + %s386_s15]] }
  0x39   : > { %v719_v39 = vmul.f32 2.4270325, %v243_v34  ;;  %v254_v40 = vmul.f32 %v238_v24, %v238_v24  ;;  %v262_v41 = vmul.f32 %v261_v14, %v240_v31  ;;  %v268_v42 = vmul.f32 %v267_v16, %v711_v32  ;;  %s762_s20 = sld [smem:[#allocation3 + %s391_s17]] }
  0x3a   : > { %v725_v43 = vmul.f32 -2.4270325, %v245_v35  ;;  %v248_v44 = vmul.f32 %v247_v36, %v239_v25  ;;  %v727_v45 = vmul.f32 -2.4270325, %v251_v37  ;;  %v273_v49 = vmul.f32 %v272_v17, %v713_v33 }
  0x3b   : > { %v255_v47 = vsub.f32 %v253_v38, %v254_v40  ;;  %v264_v48 = vadd.f32 %v263_v15, %v262_v41  ;;  %v309_v50 = vmul.f32 %v308_v27, %v240_v31  ;;  %v315_v52 = vmul.f32 %v314_v29, %v711_v32  ;;  %v514_v40 = vld [vmem:[%s204_s8 + $0x8] sm:$0xff] }
  0x3c   : > { %v513_v51 = vadd.f32 -1.0, %v248_v44  ;;  %v278_v56 = vmul.f32 %v277_v19, %v719_v39  ;;  %v320_v58 = vmul.f32 %v319_v30, %v713_v33  ;;  %v283_v60 = vmul.f32 %v282_v20, %v725_v43 }
  0x3d   : > { %v269_v55 = vadd.f32 %v268_v42, %v264_v48  ;;  %v311_v57 = vadd.f32 %v310_v28, %v309_v50  ;;  %v293_v61 = vmul.f32 %v292_v22, %v727_v45  ;;  %v256_v63 = vmul.f32 1.2135162, %v255_v47  ;;  %v516_v50 = vld [vmem:[%s204_s8 + $0x10] sm:$0xff] }
  0x3e   : > { %v250_v59 = vmul.f32 0.7006239, %v513_v51  ;;  %v325_v2 = vmul.f32 %v324_v46, %v719_v39  ;;  %v330_v4 = vmul.f32 %v329_v53, %v725_v43  ;;  %v357_v6 = vstv %s717_s28 }
  0x3f   : > { %v274_v0 = vadd.f32 %v273_v49, %v269_v55  ;;  %v316_v1 = vadd.f32 %v315_v52, %v311_v57  ;;  %v358_v9 = vmul.f32 %v357_v6, %v240_v31  ;;  %v359_v10 = vstv %s354_s9 }
  0x40   : > { %v288_v3 = vmul.f32 %v287_v21, %v250_v59  ;;  %v335_v11 = vmul.f32 %v334_v54, %v250_v59  ;;  %v363_v12 = vstv %s722_s1  ;;  %v368_v13 = vstv %s730_s4 }
  0x41   : > { %v279_v7 = vadd.f32 %v278_v56, %v274_v0  ;;  %v321_v8 = vadd.f32 %v320_v58, %v316_v1  ;;  %v373_v14 = vstv %s732_s5  ;;  %v360_v17 = vadd.f32 %v359_v10, %v358_v9 }
  0x42   : > { %v364_v18 = vmul.f32 %v363_v12, %v711_v32  ;;  %v298_v19 = vmul.f32 %v297_v26, %v256_v63  ;;  %v340_v20 = vmul.f32 %v339_v62, %v727_v45  ;;  %v369_v21 = vmul.f32 %v368_v13, %v713_v33  ;;  %v300_v33 = vld [vmem:[%s204_s8] sm:$0xff] }
  0x43   : > { %v284_v15 = vadd.f32 %v283_v60, %v279_v7  ;;  %v326_v16 = vadd.f32 %v325_v2, %v321_v8  ;;  %v378_v22 = vstv %s739_s7  ;;  %v374_v27 = vmul.f32 %v373_v14, %v719_v39 }
  0x44   : > { %v365_v25 = vadd.f32 %v364_v18, %v360_v17  ;;  %v345_v28 = vmul.f32 %v344_v5, %v256_v63  ;;  %v383_v29 = vstv %s748_s16  ;;  %v379_v32 = vmul.f32 %v378_v22, %v725_v43 }
  0x45   : > { %v289_v23 = vadd.f32 %v288_v3, %v284_v15  ;;  %v331_v24 = vadd.f32 %v330_v4, %v326_v16  ;;  %v388_v34 = vstv %s757_s21  ;;  %v384_v38 = vmul.f32 %v383_v29, %v250_v59 }
  0x46   : > { %v370_v31 = vadd.f32 %v369_v21, %v365_v25  ;;  %v393_v41 = vstv %s762_s20  ;;  %v389_v46 = vmul.f32 %v388_v34, %v727_v45 }
  0x47   : > { %v294_v26 = vadd.f32 %v293_v61, %v289_v23  ;;  %v336_v30 = vadd.f32 %v335_v11, %v331_v24  ;;  %v394_v48 = vmul.f32 %v393_v41, %v256_v63 }
  0x48   : > { %v375_v37 = vadd.f32 %v374_v27, %v370_v31 }
  0x49   : > { %v299_v35 = vadd.f32 %v298_v19, %v294_v26  ;;  %v341_v36 = vadd.f32 %v340_v20, %v336_v30 }
  0x4a   : > { %v380_v44 = vadd.f32 %v379_v32, %v375_v37 }
  0x4b   : > { %v301_v39 = vmul.f32 %v300_v33, %v299_v35  ;;  %v346_v42 = vadd.f32 %v345_v28, %v341_v36 }
  0x4c   : > { %v385_v43 = vadd.f32 %v384_v38, %v380_v44 }
  0x4d   : > { %302 = vst [vmem:[%s212_s10] sm:$0xff] %v301_v39  ;;  %v349_v47 = vmul.f32 %v514_v40, %v346_v42 }
  0x4e   : > { %v390_v49 = vadd.f32 %v389_v46, %v385_v43 }
  0x4f   : > { %515 = vst [vmem:[%s212_s10 + $0x8] sm:$0xff] %v349_v47 }
  0x50   : > { %v395_v51 = vadd.f32 %v394_v48, %v390_v49 }
  0x52   : > { %v398_v52 = vmul.f32 %v516_v50, %v395_v51 }
  0x54   : > { %517 = vst [vmem:[%s212_s10 + $0x10] sm:$0xff] %v398_v52 }
  0x55 PF: > { %s19_s19 = sadd.s32 1, %s584_s19   ;;  %s799_s17 = smov %s580_s18 }
  0x56   : > { %p16_p10 = scmp.ge.s32.totalorder %s19_s19, 4   ;;  %s800_s18 = smov %s802_s0 }
  0x58   :  { %18 = sbr.rel (!%p16_p10) target bundleno = 17 (0x11), region = 67 }

</bundles_post_ra>
